<compile_context>
chip_gen: v7x
topology: tpu7x:2x2x1
jax: 0.10.0
libtpu: 0.0.40
codegen_flags: <defaults>
</compile_context>

<pallas_src>
import jax
import jax.numpy as jnp
from jax.experimental import pallas as pl
from jax.experimental.pallas import tpu as pltpu

LANE = 128
SUBLANE = 8


def dqn_kernel(x_ref, w1_ref, b1_ref, w2_ref, b2_ref, o_ref):
    x = x_ref[...]          # (TB, 4)
    w1 = w1_ref[...]        # (4, 256)

    # fc1 on the VPU: K=4 unrolled broadcast-FMA (avoids a nearly-empty MXU push/pop).
    h = (x[:, 0:1] * w1[0:1, :]
         + x[:, 1:2] * w1[1:2, :]
         + x[:, 2:3] * w1[2:3, :]
         + x[:, 3:4] * w1[3:4, :]
         + b1_ref[...])                              # (TB, 256) + (1, 256) broadcast
    h = jnp.maximum(h, 0.0)                          # ReLU

    # fc2 on the MXU against the lane-padded (256, 128) weight tile.
    out = jnp.dot(h, w2_ref[...], preferred_element_type=jnp.float32)
    out = out + b2_ref[...]                          # (TB, 128) + (1, 128)
    o_ref[...] = out.astype(o_ref.dtype)             # full-width, unmasked store


def _round_up(n, m):
    return ((n + m - 1) // m) * m


def dqn_forward(x, w1, b1, w2, b2, *, block_b=512):
    """x: (B, 4) f32; w1: (4, 256); b1: (1, 256); w2: (256, n_actions); b2: (1, n_actions)."""
    B = x.shape[0]
    n_actions = w2.shape[1]

    # Lane-dense fc2: pad the action dimension to a full 128-lane tile.
    n_pad = _round_up(max(n_actions, LANE), LANE)
    w2p = jnp.zeros((w2.shape[0], n_pad), w2.dtype).at[:, :n_actions].set(w2)
    b2p = jnp.zeros((1, n_pad), b2.dtype).at[:, :n_actions].set(b2)

    # Batch tiling: single grid point for small B (padded to the f32 sublane multiple),
    # otherwise a "parallel" grid of TB-row blocks (double-buffered DMA, v7x dual-TC).
    if B <= block_b:
        tb = _round_up(B, SUBLANE)
    else:
        tb = block_b
    b_pad = _round_up(B, tb)
    if b_pad != B:
        x = jnp.pad(x, ((0, b_pad - B), (0, 0)))
    nb = b_pad // tb

    vmem = pltpu.MemorySpace.VMEM
    out = pl.pallas_call(
        dqn_kernel,
        out_shape=jax.ShapeDtypeStruct((b_pad, n_pad), jnp.float32),
        grid=(nb,),
        in_specs=[
            pl.BlockSpec((tb, 4), lambda i: (i, 0), memory_space=vmem),
            pl.BlockSpec(w1.shape, lambda i: (0, 0), memory_space=vmem),   # resident
            pl.BlockSpec(b1.shape, lambda i: (0, 0), memory_space=vmem),   # resident
            pl.BlockSpec(w2p.shape, lambda i: (0, 0), memory_space=vmem),  # resident
            pl.BlockSpec(b2p.shape, lambda i: (0, 0), memory_space=vmem),  # resident
        ],
        out_specs=pl.BlockSpec((tb, n_pad), lambda i: (i, 0), memory_space=vmem),
        compiler_params=pltpu.CompilerParams(dimension_semantics=("parallel",)),
    )(x, w1, b1, w2p, b2p)

    # Slice back to the real batch / action count (downstream argmax unaffected).
    return out[:B, :n_actions]


def init_params(key, n_actions):
    """Deterministic init mimicking nn.Linear (uniform +-1/sqrt(fan_in))."""
    k1, k2, k3, k4 = jax.random.split(key, 4)
    in1, out1 = 4, 256
    in2, out2 = 256, n_actions
    bound1 = 1.0 / jnp.sqrt(in1)
    bound2 = 1.0 / jnp.sqrt(in2)
    # stored as (in, out): kernel computes x @ W directly
    w1 = jax.random.uniform(k1, (in1, out1), jnp.float32, -bound1, bound1)
    b1 = jax.random.uniform(k2, (1, out1), jnp.float32, -bound1, bound1)
    w2 = jax.random.uniform(k3, (in2, out2), jnp.float32, -bound2, bound2)
    b2 = jax.random.uniform(k4, (1, out2), jnp.float32, -bound2, bound2)
    return w1, b1, w2, b2


def _reference(x, w1, b1, w2, b2):
    return jnp.maximum(x @ w1 + b1, 0.0) @ w2 + b2


if __name__ == "__main__":
    key = jax.random.PRNGKey(0)
    k_x, k_x2, k_p = jax.random.split(key, 3)

    n_actions = 2  # env_config['n_actions'] (e.g. CartPole)
    w1, b1, w2, b2 = init_params(k_p, n_actions)

    # Small acting-style batch (single grid point path).
    batch = 8
    x = jax.random.normal(k_x, (batch, 4), jnp.float32)
    out = jax.block_until_ready(dqn_forward(x, w1, b1, w2, b2))
    ref = _reference(x, w1, b1, w2, b2)
    assert out.shape == (batch, n_actions)
    assert jnp.allclose(out, ref, atol=1e-5, rtol=1e-5)

    # Larger replay-style batch (exercises the tiled, parallel grid path).
    batch_big = 1024
    x_big = jax.random.normal(k_x2, (batch_big, 4), jnp.float32)
    out_big = jax.block_until_ready(dqn_forward(x_big, w1, b1, w2, b2))
    ref_big = _reference(x_big, w1, b1, w2, b2)
    assert out_big.shape == (batch_big, n_actions)
    assert jnp.allclose(out_big, ref_big, atol=1e-5, rtol=1e-5)

    print("KERNEL_OK")
</pallas_src>

<mosaic_0001>
module attributes {stable_mosaic.version = 11 : i64} {
  func.func @dqn_kernel(%arg0: i32, %arg1: memref<8x4xf32, #tpu.memory_space<vmem>>, %arg2: memref<4x256xf32, #tpu.memory_space<vmem>>, %arg3: memref<1x256xf32, #tpu.memory_space<vmem>>, %arg4: memref<256x128xf32, #tpu.memory_space<vmem>>, %arg5: memref<1x128xf32, #tpu.memory_space<vmem>>, %arg6: memref<8x128xf32, #tpu.memory_space<vmem>>) attributes {dimension_semantics = [#tpu.dimension_semantics<parallel>], iteration_bounds = array<i64: 1>, scalar_prefetch = 0 : i64, scratch_operands = 0 : i64, tpu.core_type = #tpu.core_type<tc>, window_params = [{transform_indices = @transform_0, window_bounds = array<i64: 8, 4>}, {pipeline_mode = #tpu.pipeline_mode<synchronous>, transform_indices = @transform_1, window_bounds = array<i64: 4, 256>}, {pipeline_mode = #tpu.pipeline_mode<synchronous>, transform_indices = @transform_2, window_bounds = array<i64: 1, 256>}, {pipeline_mode = #tpu.pipeline_mode<synchronous>, transform_indices = @transform_3, window_bounds = array<i64: 256, 128>}, {pipeline_mode = #tpu.pipeline_mode<synchronous>, transform_indices = @transform_4, window_bounds = array<i64: 1, 128>}, {transform_indices = @transform_5, window_bounds = array<i64: 8, 128>}]} {
    %c0 = arith.constant 0 : index
    %c0_0 = arith.constant 0 : index
    %0 = vector.load %arg1[%c0, %c0_0] : memref<8x4xf32, #tpu.memory_space<vmem>>, vector<8x4xf32>
    %c0_1 = arith.constant 0 : index
    %c0_2 = arith.constant 0 : index
    %1 = vector.load %arg2[%c0_1, %c0_2] : memref<4x256xf32, #tpu.memory_space<vmem>>, vector<4x256xf32>
    %2 = vector.extract_strided_slice %0 {offsets = [0, 0], sizes = [8, 1], strides = [1, 1]} : vector<8x4xf32> to vector<8x1xf32>
    %3 = vector.extract_strided_slice %1 {offsets = [0, 0], sizes = [1, 256], strides = [1, 1]} : vector<4x256xf32> to vector<1x256xf32>
    %4 = vector.broadcast %2 : vector<8x1xf32> to vector<8x256xf32>
    %5 = vector.broadcast %3 : vector<1x256xf32> to vector<8x256xf32>
    %6 = arith.mulf %4, %5 : vector<8x256xf32>
    %7 = vector.extract_strided_slice %0 {offsets = [0, 1], sizes = [8, 1], strides = [1, 1]} : vector<8x4xf32> to vector<8x1xf32>
    %8 = vector.extract_strided_slice %1 {offsets = [1, 0], sizes = [1, 256], strides = [1, 1]} : vector<4x256xf32> to vector<1x256xf32>
    %9 = vector.broadcast %7 : vector<8x1xf32> to vector<8x256xf32>
    %10 = vector.broadcast %8 : vector<1x256xf32> to vector<8x256xf32>
    %11 = arith.mulf %9, %10 : vector<8x256xf32>
    %12 = arith.addf %6, %11 : vector<8x256xf32>
    %13 = vector.extract_strided_slice %0 {offsets = [0, 2], sizes = [8, 1], strides = [1, 1]} : vector<8x4xf32> to vector<8x1xf32>
    %14 = vector.extract_strided_slice %1 {offsets = [2, 0], sizes = [1, 256], strides = [1, 1]} : vector<4x256xf32> to vector<1x256xf32>
    %15 = vector.broadcast %13 : vector<8x1xf32> to vector<8x256xf32>
    %16 = vector.broadcast %14 : vector<1x256xf32> to vector<8x256xf32>
    %17 = arith.mulf %15, %16 : vector<8x256xf32>
    %18 = arith.addf %12, %17 : vector<8x256xf32>
    %19 = vector.extract_strided_slice %0 {offsets = [0, 3], sizes = [8, 1], strides = [1, 1]} : vector<8x4xf32> to vector<8x1xf32>
    %20 = vector.extract_strided_slice %1 {offsets = [3, 0], sizes = [1, 256], strides = [1, 1]} : vector<4x256xf32> to vector<1x256xf32>
    %21 = vector.broadcast %19 : vector<8x1xf32> to vector<8x256xf32>
    %22 = vector.broadcast %20 : vector<1x256xf32> to vector<8x256xf32>
    %23 = arith.mulf %21, %22 : vector<8x256xf32>
    %24 = arith.addf %18, %23 : vector<8x256xf32>
    %c0_3 = arith.constant 0 : index
    %c0_4 = arith.constant 0 : index
    %25 = vector.load %arg3[%c0_3, %c0_4] : memref<1x256xf32, #tpu.memory_space<vmem>>, vector<1x256xf32>
    %26 = vector.broadcast %25 : vector<1x256xf32> to vector<8x256xf32>
    %27 = arith.addf %24, %26 : vector<8x256xf32>
    %cst = arith.constant 0.000000e+00 : f32
    %28 = vector.broadcast %cst : f32 to vector<8x256xf32>
    %29 = arith.maximumf %27, %28 : vector<8x256xf32>
    %c0_5 = arith.constant 0 : index
    %c0_6 = arith.constant 0 : index
    %30 = vector.load %arg4[%c0_5, %c0_6] : memref<256x128xf32, #tpu.memory_space<vmem>>, vector<256x128xf32>
    %cst_7 = arith.constant dense<0.000000e+00> : vector<8x128xf32>
    %31 = tpu.matmul %29, %30, %cst_7 {dimension_numbers = #tpu.dot_dimension_numbers<[1], [0], [0], [1], [0, 0, 1, 1], [], []>} : vector<8x256xf32>, vector<256x128xf32>, vector<8x128xf32> -> vector<8x128xf32>
    %c0_8 = arith.constant 0 : index
    %c0_9 = arith.constant 0 : index
    %32 = vector.load %arg5[%c0_8, %c0_9] : memref<1x128xf32, #tpu.memory_space<vmem>>, vector<1x128xf32>
    %33 = vector.broadcast %32 : vector<1x128xf32> to vector<8x128xf32>
    %34 = arith.addf %31, %33 : vector<8x128xf32>
    %c0_10 = arith.constant 0 : index
    %c0_11 = arith.constant 0 : index
    %35 = vector.load %arg6[%c0_10, %c0_11] : memref<8x128xf32, #tpu.memory_space<vmem>>, vector<8x128xf32>
    tpu.vector_store %arg6[%c0_10, %c0_11], %34 {strides = array<i32>} : memref<8x128xf32, #tpu.memory_space<vmem>>, vector<8x128xf32>,
    return
  }
  func.func @transform_0(%arg0: i32) -> (i32, i32) {
    %c0_i32 = arith.constant 0 : i32
    %c0_i32_0 = arith.constant 0 : i32
    return %arg0, %c0_i32 : i32, i32
  }
  func.func @transform_1(%arg0: i32) -> (i32, i32) {
    %c0_i32 = arith.constant 0 : i32
    %c0_i32_0 = arith.constant 0 : i32
    %c0_i32_1 = arith.constant 0 : i32
    return %c0_i32, %c0_i32_0 : i32, i32
  }
  func.func @transform_2(%arg0: i32) -> (i32, i32) {
    %c0_i32 = arith.constant 0 : i32
    %c0_i32_0 = arith.constant 0 : i32
    %c0_i32_1 = arith.constant 0 : i32
    return %c0_i32, %c0_i32_0 : i32, i32
  }
  func.func @transform_3(%arg0: i32) -> (i32, i32) {
    %c0_i32 = arith.constant 0 : i32
    %c0_i32_0 = arith.constant 0 : i32
    %c0_i32_1 = arith.constant 0 : i32
    return %c0_i32, %c0_i32_0 : i32, i32
  }
  func.func @transform_4(%arg0: i32) -> (i32, i32) {
    %c0_i32 = arith.constant 0 : i32
    %c0_i32_0 = arith.constant 0 : i32
    %c0_i32_1 = arith.constant 0 : i32
    return %c0_i32, %c0_i32_0 : i32, i32
  }
  func.func @transform_5(%arg0: i32) -> (i32, i32) {
    %c0_i32 = arith.constant 0 : i32
    %c0_i32_0 = arith.constant 0 : i32
    return %arg0, %c0_i32 : i32, i32
  }
}

</mosaic_0001>

<bundles_post_ra>
// kernel: tpu_custom_call.1
= control target key start
LH: loop header
LB: loop body
LE: loop exit
PB: predicated region body
PF: predicated region fallthrough
CT: control target
= control target key end

     0   :  { %10 = vsyncpa [#allocation3], 0  ;;  %s485_s0 = inlined_call_operand.vmem [shape: f32[8,4], index: 0, kind: input, shape index: {}]   ;;  %s486_s1 = inlined_call_operand.vmem [shape: f32[4,256], index: 1, kind: input, shape index: {}]   ;;  %s487_s2 = inlined_call_operand.vmem [shape: f32[1,256], index: 2, kind: input, shape index: {}]   ;;  %s488_s3 = inlined_call_operand.hbm [shape: f32[256,128], index: 3, kind: input, shape index: {}]   ;;  %s489_s4 = inlined_call_operand.vmem [shape: f32[1,128], index: 4, kind: input, shape index: {}]   ;;  %s490_s5 = inlined_call_operand.hbm [shape: f32[8,128], index: 5, kind: output, shape index: {}]  }
   0x1   :  { %11 = vsyncpa [#allocation4], 0  ;;  %s411_s18 = smov [#allocation2]   ;;  %s363_s22 = scalar_lea.hbm %s488_s3, 4096 }
   0x2   :  { %s23_s19 = sshll.u32 %s411_s18, 4  ;;  %p364_p0 = scmp.ne.s32.totalorder %s488_s3, %s363_s22  ;;  %s24_s19 = int_to_ptr.vmem [resolvable:$true] %s23_s19 }
   0x3   :  { %p367_p1 = scmp.lt.u32.totalorder %s363_s22, %s488_s3 }
   0x5   :  { %p369_p2 = pnand %p367_p1, %p364_p0 }
   0x7   :  { %372 = shalt.err (!%p369_p2)
}
   0x8   :  { %s373_s27 = scalar_lea.vmem %s24_s19, 4096  ;;  %p378_p4 = scmp.lt.s32.totalorder %s24_s19, %s24_s19 }
   0x9   :  { %p374_p3 = scmp.ne.s32.totalorder %s24_s19, %s373_s27  ;;  %p379_p5 = scmp.lt.s32.totalorder %s373_s27, %s373_s27 }
   0xb   :  { %p380_p6 = por %p379_p5, %p378_p4 }
   0xd   :  { %p381_p7 = pnand %p380_p6, %p374_p3 }
   0xf   :  { %384 = shalt.err (!%p381_p7)
}
  0x10   :  { %s412_s28 = smov 128   ;;  %s413_s29 = smov 8  }
  0x11   :  { %29 = dma.hbm_to_vmem [thread:$0]  %s488_s3, 4096, %s24_s19, [#allocation3], %s412_s28, %s412_s28, %s413_s29  }
  0x12   :  { %407 = dma.done.wait [#allocation3], 4096  }
  0x13   :  { %408 = vsyncadd [#allocation3], 4294963200  ;;  %v414_v0 = vmov 0   ;;  %v415_v1 = vmov 2   ;;  %v35_v2 = vld [vmem:[%s485_s0] sm:$0xff]  ;;  %v173_v3 = vld [vmem:[#allocation2 + $0x80] sm:$0xff]  ;;  %v43_v53 = vlaneseq }
  0x14   :  { %358 = vset.pattern.permute.xlu0 %v414_v0  ;;  %360 = vset.pattern.permute.xlu1 %v415_v1  ;;  %v174_v4 = vld [vmem:[#allocation2 + $0x88] sm:$0xff]  ;;  %v157_v6 = vld [vmem:[#allocation2] sm:$0xff]  ;;  %v175_v8 = vld [vmem:[#allocation2 + $0x90] sm:$0xff]  ;;  %v416_v17 = vmov 1   ;;  %v417_v18 = vmov 3  }
  0x15   :  { %39 = vperm.xlu0 %358, %v35_v2   ;;  %90 = vperm.xlu1 %360, %v35_v2   ;;  %v318_v5 = vpack.c.bf16 %v174_v4, %v173_v3  ;;  %v158_v7 = vld [vmem:[#allocation2 + $0x8] sm:$0xff]  ;;  %v176_v10 = vld [vmem:[#allocation2 + $0x98] sm:$0xff]  ;;  %v159_v11 = vld [vmem:[#allocation2 + $0x10] sm:$0xff]  ;;  %v44_v54 = vshrl.u32 %v43_v53, 7 }
  0x16   :  { %v320_v9 = vpack.c.bf16 %v158_v7, %v157_v6  ;;  %v160_v12 = vld [vmem:[#allocation2 + $0x18] sm:$0xff]  ;;  %v322_v13 = vpack.c.bf16 %v176_v10, %v175_v8  ;;  %v177_v14 = vld [vmem:[#allocation2 + $0xa0] sm:$0xff]  ;;  %v178_v15 = vld [vmem:[#allocation2 + $0xa8] sm:$0xff] }
  0x17   :  { %319 = vmatprep.subr.bf16.mxu0 %v318_v5  ;;  %v324_v16 = vpack.c.bf16 %v160_v12, %v159_v11  ;;  %v326_v19 = vpack.c.bf16 %v178_v15, %v177_v14  ;;  %v161_v20 = vld [vmem:[#allocation2 + $0x20] sm:$0xff]  ;;  %v162_v21 = vld [vmem:[#allocation2 + $0x28] sm:$0xff]  ;;  %v179_v22 = vld [vmem:[#allocation2 + $0xb0] sm:$0xff]  ;;  %v45_v55 = vsub.s32 0, %v44_v54  ;;  %v49_v56 = vsub.s32 4, %v44_v54 }
  0x18   :  { %321 = vmatpush3.bf16.msra.mxu0 %v320_v9  ;;  %v180_v23 = vld [vmem:[#allocation2 + $0xb8] sm:$0xff]  ;;  %v328_v24 = vpack.c.bf16 %v162_v21, %v161_v20  ;;  %v163_v26 = vld [vmem:[#allocation2 + $0x30] sm:$0xff]  ;;  %v181_v28 = vld [vmem:[#allocation2 + $0xc0] sm:$0xff]  ;;  %v69_v57 = vsub.s32 1, %v44_v54  ;;  %v73_v58 = vsub.s32 5, %v44_v54  ;;  %v95_v60 = vsub.s32 2, %v44_v54 }
  0x19   :  { %359 = vset.pattern.permute.xlu0 %v416_v17  ;;  %361 = vset.pattern.permute.xlu1 %v417_v18  ;;  %v330_v25 = vpack.c.bf16 %v180_v23, %v179_v22  ;;  %v164_v27 = vld [vmem:[#allocation2 + $0x38] sm:$0xff]  ;;  %v182_v29 = vld [vmem:[#allocation2 + $0xc8] sm:$0xff]  ;;  %v165_v32 = vld [vmem:[#allocation2 + $0x40] sm:$0xff]  ;;  %v99_v61 = vsub.s32 6, %v44_v54  ;;  %v121_v62 = vsub.s32 3, %v44_v54  ;;  %v125_v63 = vsub.s32 7, %v44_v54 }
  0x1a   :  { %64 = vperm.xlu0 %359, %v35_v2   ;;  %116 = vperm.xlu1 %361, %v35_v2   ;;  %v332_v30 = vpack.c.bf16 %v164_v27, %v163_v26  ;;  %v334_v31 = vpack.c.bf16 %v182_v29, %v181_v28  ;;  %v166_v33 = vld [vmem:[#allocation2 + $0x48] sm:$0xff]  ;;  %v183_v34 = vld [vmem:[#allocation2 + $0xd0] sm:$0xff]  ;;  %v184_v35 = vld [vmem:[#allocation2 + $0xd8] sm:$0xff] }
  0x1b   :  { %323 = vmatprep.subr.bf16.mxu0 %v322_v13  ;;  %v336_v36 = vpack.c.bf16 %v166_v33, %v165_v32  ;;  %v338_v37 = vpack.c.bf16 %v184_v35, %v183_v34  ;;  %v167_v38 = vld [vmem:[#allocation2 + $0x50] sm:$0xff]  ;;  %v168_v39 = vld [vmem:[#allocation2 + $0x58] sm:$0xff]  ;;  %v185_v40 = vld [vmem:[#allocation2 + $0xe0] sm:$0xff] }
  0x1c   :  { %325 = vmatpush3.bf16.msra.mxu0 %v324_v16  ;;  %v186_v41 = vld [vmem:[#allocation2 + $0xe8] sm:$0xff]  ;;  %v340_v42 = vpack.c.bf16 %v168_v39, %v167_v38  ;;  %v169_v44 = vld [vmem:[#allocation2 + $0x60] sm:$0xff]  ;;  %v187_v46 = vld [vmem:[#allocation2 + $0xf0] sm:$0xff] }
  0x1d   :  { %327 = vmatprep.subr.bf16.mxu0 %v326_v19  ;;  %v342_v43 = vpack.c.bf16 %v186_v41, %v185_v40  ;;  %v170_v45 = vld [vmem:[#allocation2 + $0x68] sm:$0xff]  ;;  %v188_v47 = vld [vmem:[#allocation2 + $0xf8] sm:$0xff]  ;;  %v171_v50 = vld [vmem:[#allocation2 + $0x70] sm:$0xff] }
  0x1e   :  { %362 = vset.pattern.permute.xlu0 %v417_v18  ;;  %v344_v48 = vpack.c.bf16 %v170_v45, %v169_v44  ;;  %v346_v49 = vpack.c.bf16 %v188_v47, %v187_v46  ;;  %v172_v51 = vld [vmem:[#allocation2 + $0x78] sm:$0xff] }
  0x1f   :  { %v348_v52 = vpack.c.bf16 %v172_v51, %v171_v50  ;;  %v36_v59 = vld [vmem:[%s486_s1] sm:$0xff] }
  0x20   :  { %329 = vmatpush3.bf16.msra.mxu0 %v328_v24  ;;  %v46_v0 = vrot.slane %v36_v59, %v45_v55  ;;  %v50_v1 = vrot.slane %v36_v59, %v49_v56  ;;  %v70_v2 = vrot.slane %v36_v59, %v69_v57  ;;  %v74_v3 = vrot.slane %v36_v59, %v73_v58  ;;  %v141_v26 = vld [vmem:[%s487_s2] sm:$0x3]  ;;  %s418_s2 = smov [#allocation5]  }
  0x21   :  { %331 = vmatprep.subr.bf16.mxu0 %v330_v25  ;;  %v96_v4 = vrot.slane %v36_v59, %v95_v60  ;;  %v100_v5 = vrot.slane %v36_v59, %v99_v61  ;;  %v122_v8 = vrot.slane %v36_v59, %v121_v62  ;;  %v126_v9 = vrot.slane %v36_v59, %v125_v63  ;;  %s273_s12 = sshll.u32 %s418_s2, 4  ;;  %s274_s12 = int_to_ptr.vmem [resolvable:$true] %s273_s12 }
  0x22   :  { %v56_v10 = vrot.slane %v46_v0, %v45_v55  ;;  %v60_v11 = vrot.slane %v50_v1, %v45_v55  ;;  %v80_v12 = vrot.slane %v70_v2, %v69_v57  ;;  %v84_v13 = vrot.slane %v74_v3, %v69_v57  ;;  %s385_s13 = scalar_lea.vmem %s274_s12, 128  ;;  %p390_p9 = scmp.lt.s32.totalorder %s274_s12, %s274_s12 }
  0x23   :  { %v106_v14 = vrot.slane %v96_v4, %v95_v60  ;;  %v110_v15 = vrot.slane %v100_v5, %v95_v60  ;;  %v132_v16 = vrot.slane %v122_v8, %v121_v62  ;;  %v136_v17 = vrot.slane %v126_v9, %v121_v62  ;;  %p386_p8 = scmp.ne.s32.totalorder %s274_s12, %s385_s13  ;;  %p391_p10 = scmp.lt.s32.totalorder %s385_s13, %s385_s13 }
  0x24   :  { %333 = vmatpush3.bf16.msra.mxu0 %v332_v30  ;;  %v146_v33 = vrot.slane %v141_v26, %v45_v55  ;;  %v150_v34 = vrot.slane %v141_v26, %v69_v57 }
  0x25   :  { %335 = vmatprep.subr.bf16.mxu0 %v334_v31  ;;  %p392_p11 = por %p391_p10, %p390_p9 }
  0x27   :  { %p393_p12 = pnand %p392_p11, %p386_p8 }
  0x28   :  { %337 = vmatpush3.bf16.msra.mxu0 %v336_v36 }
  0x29   :  { %339 = vmatprep.subr.bf16.mxu0 %v338_v37 }
  0x2c   :  { %341 = vmatpush3.bf16.msra.mxu0 %v340_v42  ;;  %v282_v42 = vld [vmem:[%s489_s4] ss:$0 sm:$0xff] }
  0x2d   :  { %343 = vmatprep.subr.bf16.mxu0 %v342_v43 }
  0x30   :  { %345 = vmatpush3.bf16.msra.mxu0 %v344_v48 }
  0x31   :  { %347 = vmatprep.subr.bf16.mxu0 %v346_v49 }
  0x34   :  { %349 = vmatpush3.bf16.msra.mxu0 %v348_v52 }
  0x94   :  { %v40_v6 = vpop.permute.xlu0 %39  ;;  %v91_v7 = vpop.permute.xlu1 %90 }
  0x95   :  { %v61_v20 = vmul.f32 %v56_v10, %v40_v6  ;;  %v62_v21 = vmul.f32 %v60_v11, %v40_v6  ;;  %v111_v24 = vmul.f32 %v106_v14, %v91_v7  ;;  %v112_v25 = vmul.f32 %v110_v15, %v91_v7 }
  0x99   :  { %v65_v18 = vpop.permute.xlu0 %64  ;;  %v117_v19 = vpop.permute.xlu1 %116 }
  0x9a   :  { %v85_v22 = vmul.f32 %v80_v12, %v65_v18  ;;  %v86_v23 = vmul.f32 %v84_v13, %v65_v18  ;;  %v137_v29 = vmul.f32 %v132_v16, %v117_v19  ;;  %v138_v30 = vmul.f32 %v136_v17, %v117_v19 }
  0x9c   :  { %v87_v27 = vadd.f32 %v85_v22, %v61_v20  ;;  %v88_v28 = vadd.f32 %v86_v23, %v62_v21 }
  0x9e   :  { %v113_v31 = vadd.f32 %v111_v24, %v87_v27  ;;  %v114_v32 = vadd.f32 %v112_v25, %v88_v28 }
  0xa0   :  { %v139_v35 = vadd.f32 %v137_v29, %v113_v31  ;;  %v140_v36 = vadd.f32 %v138_v30, %v114_v32 }
  0xa2   :  { %v154_v37 = vadd.f32 %v150_v34, %v140_v36  ;;  %v153_v38 = vadd.f32 %v146_v33, %v139_v35 }
  0xa4   :  { %v156_v39 = vmax.f32 %v154_v37, 0.0  ;;  %v155_v40 = vmax.f32 %v153_v38, 0.0 }
  0xa6   :  { %260 = vmatprep.mubr.f32.mxu0 %v156_v39 }
  0xa7   :  { %261 = vmatmul.mubr.f32.vlgmr.msra.gmra.mrb[0].mxu0 %v155_v40 }
 0x17a   :  { %v315_v41 = vpop.f32.mrb[0].mxu0 }
 0x17b   :  { %v316_v43 = vpop.f32.mrb[1].mxu0 }
 0x17c   :  { %v317_v44 = vadd.f32 %v316_v43, %v315_v41 }
 0x17e   :  { %v263_v45 = vadd.f32 %v317_v44, %v282_v42 }
 0x180   :  { %266 = vst [vmem:[#allocation5] sm:$0xff] %v263_v45 }
 0x181   :  { %396 = shalt.err (!%p393_p12)
}
 0x182   :  { %s397_s16 = scalar_lea.hbm %s490_s5, 128 }
 0x183   :  { %p398_p13 = scmp.ne.s32.totalorder %s490_s5, %s397_s16  ;;  %p401_p0 = scmp.lt.u32.totalorder %s397_s16, %s490_s5 }
 0x185   :  { %p403_p1 = pnand %p401_p0, %p398_p13 }
 0x187   :  { %406 = shalt.err (!%p403_p1)
}
 0x188   :  { %276 = dma.vmem_to_hbm [thread:$0]  %s274_s12, 128, %s490_s5, [#allocation4]  }
 0x189   :  { %409 = dma.done.wait [#allocation4], 128  }
 0x18a   :  { %410 = vsyncadd [#allocation4], 4294967168 }
 0x18b   :  { %280 = vsyncpa [#allocation3], 1 }
 0x18c   :  { %281 = vsyncpa [#allocation4], 1 }

</bundles_post_ra>
